<compile_context>
chip_gen: v5e
topology: v5e:2x2
jax: 0.10.0
libtpu: 0.0.40
codegen_flags: <defaults>
</compile_context>

<pallas_src>
import jax
import jax.numpy as jnp
from jax.experimental import pallas as pl
from jax.experimental.pallas import tpu as pltpu

# Logical dims of the PyTorch module.
IN_DIM = 190
H1_DIM = 64
H2_DIM = 32
OUT_DIM = 3

OUT_PAD = 8     # 3 -> 8 output lanes: last dim == full array dim, contiguous DMA
TB_MAX = 4096   # batch tile cap; ~6 MiB double-buffered, fits v5e/v6e/v7x scoped VMEM


def mlp_kernel(x_ref, w1_ref, b1_ref, w2_ref, b2_ref, w3_ref, b3_ref, o_ref):
    # Whole MLP in f32: dots accumulate on the MXU, bias-add + ReLU on the VPU.
    x = x_ref[...]
    h1 = jnp.dot(x, w1_ref[...], preferred_element_type=jnp.float32) + b1_ref[...]
    h1 = jnp.maximum(h1, 0.0)
    h2 = jnp.dot(h1, w2_ref[...], preferred_element_type=jnp.float32) + b2_ref[...]
    h2 = jnp.maximum(h2, 0.0)
    o_ref[...] = (
        jnp.dot(h2, w3_ref[...], preferred_element_type=jnp.float32) + b3_ref[...]
    )


def prepare_params(params):
    """One-time padding of the last layer's columns (3 -> 8 lanes)."""
    w1, b1, w2, b2, w3, b3 = params
    w3p = jnp.zeros((H2_DIM, OUT_PAD), jnp.float32).at[:, :OUT_DIM].set(w3)
    b3p = jnp.zeros((1, OUT_PAD), jnp.float32).at[:, :OUT_DIM].set(b3)
    return (
        w1.astype(jnp.float32),
        b1.astype(jnp.float32),
        w2.astype(jnp.float32),
        b2.astype(jnp.float32),
        w3p,
        b3p,
    )


def _round_up(v, m):
    return ((v + m - 1) // m) * m


@jax.jit
def mlp_forward(x, prepared):
    w1, b1, w2, b2, w3, b3 = prepared
    batch = x.shape[0]

    # Batch tile: multiple of 8 sublanes, capped at TB_MAX.  If the batch is
    # big enough to split, force an even number of grid steps (>= 2) so v7x
    # can shard the "parallel" batch axis evenly over its two TensorCores.
    steps = pl.cdiv(batch, TB_MAX)
    if batch >= 16:
        steps = max(steps, 2)
    if steps > 1 and steps % 2 == 1:
        steps += 1
    tb = min(TB_MAX, _round_up(pl.cdiv(batch, steps), 8))
    grid = (pl.cdiv(batch, tb),)   # ragged last block handled by Pallas

    const = lambda i: (0, 0)  # weights/biases: same block every step (VMEM-resident)

    out_padded = pl.pallas_call(
        mlp_kernel,
        out_shape=jax.ShapeDtypeStruct((batch, OUT_PAD), jnp.float32),
        grid=grid,
        in_specs=[
            pl.BlockSpec((tb, IN_DIM), lambda i: (i, 0)),   # x tile (last dim = full 190)
            pl.BlockSpec((IN_DIM, H1_DIM), const),          # w1
            pl.BlockSpec((1, H1_DIM), const),               # b1
            pl.BlockSpec((H1_DIM, H2_DIM), const),          # w2
            pl.BlockSpec((1, H2_DIM), const),               # b2
            pl.BlockSpec((H2_DIM, OUT_PAD), const),         # w3 (padded cols)
            pl.BlockSpec((1, OUT_PAD), const),              # b3 (padded cols)
        ],
        out_specs=pl.BlockSpec((tb, OUT_PAD), lambda i: (i, 0)),
        compiler_params=pltpu.CompilerParams(
            dimension_semantics=("parallel",),  # shard batch across v7x's 2 TCs
        ),
    )(x, w1, b1, w2, b2, w3, b3)

    # Strip the 3 -> 8 lane padding.
    return out_padded[:, :OUT_DIM]


def init_params(key):
    # Deterministic init (uniform, PyTorch-Linear-style bound 1/sqrt(fan_in)).
    dims = [(IN_DIM, H1_DIM), (H1_DIM, H2_DIM), (H2_DIM, OUT_DIM)]
    params = []
    for (fan_in, fan_out) in dims:
        key, kw, kb = jax.random.split(key, 3)
        bound = 1.0 / jnp.sqrt(fan_in)
        w = jax.random.uniform(kw, (fan_in, fan_out), jnp.float32, -bound, bound)
        b = jax.random.uniform(kb, (1, fan_out), jnp.float32, -bound, bound)
        params += [w, b]
    return params


def reference_forward(x, params):
    w1, b1, w2, b2, w3, b3 = params
    h1 = jnp.maximum(x @ w1 + b1, 0.0)
    h2 = jnp.maximum(h1 @ w2 + b2, 0.0)
    return h2 @ w3 + b3


if __name__ == "__main__":
    key = jax.random.PRNGKey(0)
    key, kx = jax.random.split(key)
    batch = 16
    x = jax.random.normal(kx, (batch, IN_DIM), jnp.float32)
    params = init_params(key)
    prepared = prepare_params(params)

    out = mlp_forward(x, prepared)
    out = jax.block_until_ready(out)

    ref = reference_forward(x, params)
    assert out.shape == (batch, OUT_DIM)
    assert jnp.allclose(out, ref, atol=5e-2, rtol=5e-2), float(
        jnp.max(jnp.abs(out - ref))
    )
    print("KERNEL_OK")
</pallas_src>

<mosaic_0001>
module attributes {stable_mosaic.version = 11 : i64} {
  func.func @mlp_kernel(%arg0: i32, %arg1: memref<8x190xf32, #tpu.memory_space<vmem>>, %arg2: memref<190x64xf32, #tpu.memory_space<vmem>>, %arg3: memref<1x64xf32, #tpu.memory_space<vmem>>, %arg4: memref<64x32xf32, #tpu.memory_space<vmem>>, %arg5: memref<1x32xf32, #tpu.memory_space<vmem>>, %arg6: memref<32x8xf32, #tpu.memory_space<vmem>>, %arg7: memref<1x8xf32, #tpu.memory_space<vmem>>, %arg8: memref<8x8xf32, #tpu.memory_space<vmem>>) attributes {dimension_semantics = [#tpu.dimension_semantics<parallel>], iteration_bounds = array<i64: 2>, scalar_prefetch = 0 : i64, scratch_operands = 0 : i64, tpu.core_type = #tpu.core_type<tc>, window_params = [{transform_indices = @transform_0, window_bounds = array<i64: 8, 190>}, {pipeline_mode = #tpu.pipeline_mode<synchronous>, transform_indices = @transform_1, window_bounds = array<i64: 190, 64>}, {pipeline_mode = #tpu.pipeline_mode<synchronous>, transform_indices = @transform_2, window_bounds = array<i64: 1, 64>}, {pipeline_mode = #tpu.pipeline_mode<synchronous>, transform_indices = @transform_3, window_bounds = array<i64: 64, 32>}, {pipeline_mode = #tpu.pipeline_mode<synchronous>, transform_indices = @transform_4, window_bounds = array<i64: 1, 32>}, {pipeline_mode = #tpu.pipeline_mode<synchronous>, transform_indices = @transform_5, window_bounds = array<i64: 32, 8>}, {pipeline_mode = #tpu.pipeline_mode<synchronous>, transform_indices = @transform_6, window_bounds = array<i64: 1, 8>}, {transform_indices = @transform_7, window_bounds = array<i64: 8, 8>}]} {
    %c0 = arith.constant 0 : index
    %c0_0 = arith.constant 0 : index
    %0 = vector.load %arg1[%c0, %c0_0] : memref<8x190xf32, #tpu.memory_space<vmem>>, vector<8x190xf32>
    %c0_1 = arith.constant 0 : index
    %c0_2 = arith.constant 0 : index
    %1 = vector.load %arg2[%c0_1, %c0_2] : memref<190x64xf32, #tpu.memory_space<vmem>>, vector<190x64xf32>
    %cst = arith.constant dense<0.000000e+00> : vector<8x64xf32>
    %2 = tpu.matmul %0, %1, %cst {dimension_numbers = #tpu.dot_dimension_numbers<[1], [0], [0], [1], [0, 0, 1, 1], [], []>} : vector<8x190xf32>, vector<190x64xf32>, vector<8x64xf32> -> vector<8x64xf32>
    %c0_3 = arith.constant 0 : index
    %c0_4 = arith.constant 0 : index
    %3 = vector.load %arg3[%c0_3, %c0_4] : memref<1x64xf32, #tpu.memory_space<vmem>>, vector<1x64xf32>
    %4 = vector.broadcast %3 : vector<1x64xf32> to vector<8x64xf32>
    %5 = arith.addf %2, %4 : vector<8x64xf32>
    %cst_5 = arith.constant 0.000000e+00 : f32
    %6 = vector.broadcast %cst_5 : f32 to vector<8x64xf32>
    %7 = arith.maximumf %5, %6 : vector<8x64xf32>
    %c0_6 = arith.constant 0 : index
    %c0_7 = arith.constant 0 : index
    %8 = vector.load %arg4[%c0_6, %c0_7] : memref<64x32xf32, #tpu.memory_space<vmem>>, vector<64x32xf32>
    %cst_8 = arith.constant dense<0.000000e+00> : vector<8x32xf32>
    %9 = tpu.matmul %7, %8, %cst_8 {dimension_numbers = #tpu.dot_dimension_numbers<[1], [0], [0], [1], [0, 0, 1, 1], [], []>} : vector<8x64xf32>, vector<64x32xf32>, vector<8x32xf32> -> vector<8x32xf32>
    %c0_9 = arith.constant 0 : index
    %c0_10 = arith.constant 0 : index
    %10 = vector.load %arg5[%c0_9, %c0_10] : memref<1x32xf32, #tpu.memory_space<vmem>>, vector<1x32xf32>
    %11 = vector.broadcast %10 : vector<1x32xf32> to vector<8x32xf32>
    %12 = arith.addf %9, %11 : vector<8x32xf32>
    %cst_11 = arith.constant 0.000000e+00 : f32
    %13 = vector.broadcast %cst_11 : f32 to vector<8x32xf32>
    %14 = arith.maximumf %12, %13 : vector<8x32xf32>
    %c0_12 = arith.constant 0 : index
    %c0_13 = arith.constant 0 : index
    %15 = vector.load %arg6[%c0_12, %c0_13] : memref<32x8xf32, #tpu.memory_space<vmem>>, vector<32x8xf32>
    %cst_14 = arith.constant dense<0.000000e+00> : vector<8x8xf32>
    %16 = tpu.matmul %14, %15, %cst_14 {dimension_numbers = #tpu.dot_dimension_numbers<[1], [0], [0], [1], [0, 0, 1, 1], [], []>} : vector<8x32xf32>, vector<32x8xf32>, vector<8x8xf32> -> vector<8x8xf32>
    %c0_15 = arith.constant 0 : index
    %c0_16 = arith.constant 0 : index
    %17 = vector.load %arg7[%c0_15, %c0_16] : memref<1x8xf32, #tpu.memory_space<vmem>>, vector<1x8xf32>
    %18 = vector.broadcast %17 : vector<1x8xf32> to vector<8x8xf32>
    %19 = arith.addf %16, %18 : vector<8x8xf32>
    %c0_17 = arith.constant 0 : index
    %c0_18 = arith.constant 0 : index
    %20 = vector.load %arg8[%c0_17, %c0_18] : memref<8x8xf32, #tpu.memory_space<vmem>>, vector<8x8xf32>
    tpu.vector_store %arg8[%c0_17, %c0_18], %19 {strides = array<i32>} : memref<8x8xf32, #tpu.memory_space<vmem>>, vector<8x8xf32>,
    return
  }
  func.func @transform_0(%arg0: i32) -> (i32, i32) {
    %c0_i32 = arith.constant 0 : i32
    %c0_i32_0 = arith.constant 0 : i32
    return %arg0, %c0_i32 : i32, i32
  }
  func.func @transform_1(%arg0: i32) -> (i32, i32) {
    %c0_i32 = arith.constant 0 : i32
    %c0_i32_0 = arith.constant 0 : i32
    %c0_i32_1 = arith.constant 0 : i32
    return %c0_i32, %c0_i32_0 : i32, i32
  }
  func.func @transform_2(%arg0: i32) -> (i32, i32) {
    %c0_i32 = arith.constant 0 : i32
    %c0_i32_0 = arith.constant 0 : i32
    %c0_i32_1 = arith.constant 0 : i32
    return %c0_i32, %c0_i32_0 : i32, i32
  }
  func.func @transform_3(%arg0: i32) -> (i32, i32) {
    %c0_i32 = arith.constant 0 : i32
    %c0_i32_0 = arith.constant 0 : i32
    %c0_i32_1 = arith.constant 0 : i32
    return %c0_i32, %c0_i32_0 : i32, i32
  }
  func.func @transform_4(%arg0: i32) -> (i32, i32) {
    %c0_i32 = arith.constant 0 : i32
    %c0_i32_0 = arith.constant 0 : i32
    %c0_i32_1 = arith.constant 0 : i32
    return %c0_i32, %c0_i32_0 : i32, i32
  }
  func.func @transform_5(%arg0: i32) -> (i32, i32) {
    %c0_i32 = arith.constant 0 : i32
    %c0_i32_0 = arith.constant 0 : i32
    %c0_i32_1 = arith.constant 0 : i32
    return %c0_i32, %c0_i32_0 : i32, i32
  }
  func.func @transform_6(%arg0: i32) -> (i32, i32) {
    %c0_i32 = arith.constant 0 : i32
    %c0_i32_0 = arith.constant 0 : i32
    %c0_i32_1 = arith.constant 0 : i32
    return %c0_i32, %c0_i32_0 : i32, i32
  }
  func.func @transform_7(%arg0: i32) -> (i32, i32) {
    %c0_i32 = arith.constant 0 : i32
    %c0_i32_0 = arith.constant 0 : i32
    return %arg0, %c0_i32 : i32, i32
  }
}

</mosaic_0001>

<bundles_post_ra>
// kernel: mlp_forward.1
= control target key start
LH: loop header
LB: loop body
LE: loop exit
PB: predicated region body
PF: predicated region fallthrough
CT: control target
= control target key end

     0   :  { %s554_s24 = smov 0   ;;  %s692_s0 = inlined_call_operand.vmem [shape: f32[16,190], index: 0, kind: input, shape index: {}]   ;;  %s693_s1 = inlined_call_operand.vmem [shape: f32[190,64], index: 1, kind: input, shape index: {}]   ;;  %s694_s2 = inlined_call_operand.vmem [shape: f32[1,64], index: 2, kind: input, shape index: {}]   ;;  %s695_s3 = inlined_call_operand.vmem [shape: f32[64,32], index: 3, kind: input, shape index: {}]   ;;  %s696_s4 = inlined_call_operand.vmem [shape: f32[1,32], index: 4, kind: input, shape index: {}]   ;;  %s697_s5 = inlined_call_operand.vmem [shape: f32[32,8], index: 5, kind: input, shape index: {}]   ;;  %s698_s6 = inlined_call_operand.vmem [shape: f32[1,8], index: 6, kind: input, shape index: {}]   ;;  %s699_s7 = inlined_call_operand.vmem [shape: f32[16,8], index: 7, kind: output, shape index: {}]  }
   0x1 LB: > { %s480_s25 = sadd.s32 4294967295, %s512_s24   ;;  %p484_p0 = scmp.ge.s32.totalorder %s512_s24, 1  ;;  %s512_s24 = sphi %s554_s24, %s17_s24  }
   0x2   : > { %p237_p1 = scmp.lt.s32.totalorder %s512_s24, 3 }
   0x4   : > { %p238_p2 = pnand %p484_p0, %p237_p1 }
   0x5   : > { %p268_p3 = scmp.lt.s32.totalorder (!%p238_p2), %s480_s25, 1 }
   0x6   : > { %241 = sbr.rel (%p238_p2) target bundleno = 446 (0x1be), region = 48 }
   0xb   : > { %v294_v0 = vld [vmem:[%s693_s1 + $0x78] sm:$0xff]  ;;  %v293_v1 = vld [vmem:[%s693_s1 + $0x70] sm:$0xff]  ;;  %vm311_vm0 = vcmask 1045504   ;;  %v292_v2 = vld [vmem:[%s693_s1 + $0x68] sm:$0xff]  ;;  %s701_s25 = smov (!%p268_p3, %s480_s25), 1  ;;  %vm307_vm1 = vcmask 506880  }
   0xc   : > { %315 = vmatpush.msra.mxu0 %v294_v0  ;;  %v302_v3 = vld [vmem:[%s693_s1 + $0xb8] sm:$0x3f]  ;;  %v291_v4 = vld [vmem:[%s693_s1 + $0x60] sm:$0xff]  ;;  %v301_v5 = vld [vmem:[%s693_s1 + $0xb0] sm:$0xff]  ;;  %s494_s16 = sshll.u32 %s701_s25, 4  ;;  %vm368_vm2 = vcmask 523264  }
   0xd   : > { %488 = vmatpush.msk.msra.mxu1 %vm311_vm0, %v302_v3  ;;  %v300_v6 = vld [vmem:[%s693_s1 + $0xa8] sm:$0xff]  ;;  %v290_v7 = vld [vmem:[%s693_s1 + $0x58] sm:$0xff]  ;;  %v299_v8 = vld [vmem:[%s693_s1 + $0xa0] sm:$0xff]  ;;  %s272_s27 = scalar_lea.vmem %s692_s0, %s494_s16  ;;  %vm401_vm3 = vcmask 261120   ;;  %s487_s20 = sshll.u32 %s701_s25, 3  ;;  %vm425_vm4 = vcmask 64512  }
   0xe   : > { %316 = vmatpush.msra.mxu0 %v293_v1  ;;  %v289_v9 = vld [vmem:[%s693_s1 + $0x50] sm:$0xff]  ;;  %v363_v10 = vld [vmem:[%s695_s3 + $0x38] sm:$0xff]  ;;  %v288_v11 = vld [vmem:[%s693_s1 + $0x48] sm:$0xff]  ;;  %s276_s28 = scalar_lea.vmem %s699_s7, %s487_s20 }
   0xf   : > { %344 = vmatpush.msra.mxu1 %v301_v5  ;;  %v298_v12 = vld [vmem:[%s693_s1 + $0x98] sm:$0xff]  ;;  %380 = vmatpush.msra.mxu2 %v363_v10  ;;  %v362_v13 = vld [vmem:[%s695_s3 + $0x30] sm:$0xff]  ;;  %v361_v14 = vld [vmem:[%s695_s3 + $0x28] sm:$0xff] }
  0x10   : > { %317 = vmatpush.msra.mxu0 %v292_v2  ;;  %v297_v15 = vld [vmem:[%s693_s1 + $0x90] sm:$0xff]  ;;  %v287_v16 = vld [vmem:[%s693_s1 + $0x40] sm:$0xff]  ;;  %v296_v18 = vld [vmem:[%s693_s1 + $0x88] sm:$0xff] }
  0x11   : > { %345 = vmatpush.msra.mxu1 %v300_v6  ;;  %381 = vmatpush.msra.mxu2 %v362_v13  ;;  %v360_v17 = vld [vmem:[%s695_s3 + $0x20] sm:$0xff]  ;;  %v286_v19 = vld [vmem:[%s693_s1 + $0x38] sm:$0xff]  ;;  %v285_v21 = vld [vmem:[%s693_s1 + $0x30] sm:$0xff] }
  0x12   : > { %318 = vmatpush.msra.mxu0 %v291_v4  ;;  %v295_v20 = vld [vmem:[%s693_s1 + $0x80] sm:$0xff]  ;;  %v278_v22 = vld [vmem:[%s272_s27 + $0x8] sm:$0xff]  ;;  %v282_v25 = vld [vmem:[%s693_s1 + $0x18] sm:$0xff] }
  0x13   : > { %346 = vmatpush.msra.mxu1 %v299_v8  ;;  %382 = vmatpush.msra.mxu2 %v361_v14  ;;  %v284_v23 = vld [vmem:[%s693_s1 + $0x28] sm:$0xff]  ;;  %v283_v24 = vld [vmem:[%s693_s1 + $0x20] sm:$0xff]  ;;  %v281_v26 = vld [vmem:[%s693_s1 + $0x10] sm:$0xff] }
  0x14   : > { %319 = vmatpush.msra.mxu0 %v290_v7  ;;  %v280_v27 = vld [vmem:[%s693_s1 + $0x8] sm:$0xff]  ;;  %v279_v28 = vld [vmem:[%s693_s1] sm:$0xff]  ;;  %v359_v30 = vld [vmem:[%s695_s3 + $0x18] sm:$0xff] }
  0x15   : > { %347 = vmatpush.msra.mxu1 %v298_v12  ;;  %383 = vmatpush.msra.mxu2 %v360_v17  ;;  %v277_v29 = vld [vmem:[%s272_s27] sm:$0xff]  ;;  %v358_v31 = vld [vmem:[%s695_s3 + $0x10] sm:$0xff]  ;;  %v357_v32 = vld [vmem:[%s695_s3 + $0x8] sm:$0xff] }
  0x16   : > { %320 = vmatpush.msra.mxu0 %v289_v9  ;;  %v356_v33 = vld [vmem:[%s695_s3] sm:$0xff]  ;;  %v396_v34 = vld [vmem:[%s697_s5 + $0x18] sm:$0xff]  ;;  %v395_v41 = vld [vmem:[%s697_s5 + $0x10] sm:$0xff] }
  0x17   : > { %348 = vmatpush.msra.mxu1 %v297_v15  ;;  %384 = vmatpush.msra.mxu2 %v359_v30  ;;  %v503_v35 = vld [vmem:[%s694_s2] ss:$0 sm:$0xff]  ;;  %v394_v42 = vld [vmem:[%s697_s5 + $0x8] sm:$0xff] }
  0x18   : > { %321 = vmatpush.msra.mxu0 %v288_v11  ;;  %417 = vmatpush.msra.mxu3 %v396_v34  ;;  %v393_v43 = vld [vmem:[%s697_s5] sm:$0xff] }
  0x19   : > { %349 = vmatpush.msra.mxu1 %v296_v18  ;;  %385 = vmatpush.msra.mxu2 %v358_v31  ;;  %v504_v44 = vld [vmem:[%s696_s4] ss:$0 sm:$0xff] }
  0x1a   : > { %322 = vmatpush.msra.mxu0 %v287_v16  ;;  %418 = vmatpush.msra.mxu3 %v395_v41  ;;  %v505_v48 = vld [vmem:[%s698_s6] ss:$0 sm:$0xff] }
  0x1b   : > { %350 = vmatpush.msra.mxu1 %v295_v20  ;;  %386 = vmatpush.msra.mxu2 %v357_v32 }
  0x1c   : > { %323 = vmatpush.msra.mxu0 %v286_v19  ;;  %489 = vmatmul.msk.f32.vlgmr.msra.gmra.mxu1 %vm307_vm1, %v278_v22 }
  0x1d   : > { %387 = vmatpush.msra.mxu2 %v356_v33  ;;  %419 = vmatpush.msra.mxu3 %v394_v42 }
  0x1e   : > { %324 = vmatpush.msra.mxu0 %v285_v21 }
  0x1f   : > { %420 = vmatpush.msra.mxu3 %v393_v43 }
  0x20   : > { %325 = vmatpush.msra.mxu0 %v284_v23 }
  0x22   : > { %326 = vmatpush.msra.mxu0 %v283_v24 }
  0x24   : > { %327 = vmatpush.msra.mxu0 %v282_v25 }
  0x26   : > { %328 = vmatpush.msra.mxu0 %v281_v26 }
  0x28   : > { %329 = vmatpush.msra.mxu0 %v280_v27 }
  0x2a   : > { %330 = vmatpush.msra.mxu0 %v279_v28 }
  0x2b   : > { %331 = vmatmul.f32.vlgmr.msra.gmra.mxu0 %v277_v29 }
  0x99   : > { %v352_v37 = vpop.f32.mrf.mxu1 }
  0xa8   : > { %v332_v36 = vpop.f32.mrf.mxu0 }
  0xa9   : > { %v333_v38 = vadd.f32 %v503_v35, %v332_v36 }
  0xab   : > { %v353_v39 = vadd.f32 %v352_v37, %v333_v38 }
  0xad   : > { %v355_v40 = vmax.f32 %v353_v39, 0.0 }
  0xaf   : > { %490 = vmatmul.msk.f32.vlgmr.msra.gmra.mxu2 %vm368_vm2, %v355_v40 }
 0x132   : > { %v389_v45 = vpop.f32.mrf.mxu2 }
 0x133   : > { %v390_v46 = vadd.f32 %v504_v44, %v389_v45 }
 0x135   : > { %v392_v47 = vmax.f32 %v390_v46, 0.0 }
 0x137   : > { %491 = vmatmul.msk.f32.vlgmr.msra.gmra.mxu3 %vm401_vm3, %v392_v47 }
 0x1ba   : > { %v422_v49 = vpop.f32.mrf.mxu3 }
 0x1bb   : > { %v423_v50 = vadd.f32 %v505_v48, %v422_v49 }
 0x1bd   : > { %426 = vst.msk [vmem:[%s276_s28] sm:$0xff] %vm425_vm4, %v423_v50 }
 0x1be PF: > { %s17_s24 = sadd.s32 1, %s512_s24  }
 0x1bf   : > { %p14_p4 = scmp.ge.s32.totalorder %s17_s24, 4  }
 0x1c1   :  { %16 = sbr.rel (!%p14_p4) target bundleno = 1 (0x1), region = 78 }

</bundles_post_ra>
